<compile_context>
chip_gen: v7x
topology: tpu7x:2x2x1
jax: 0.10.0
libtpu: 0.0.40
codegen_flags: <defaults>
</compile_context>

<pallas_src>
import jax
import jax.numpy as jnp
from jax.experimental import pallas as pl
from jax.experimental.pallas import tpu as pltpu


def _round_up(x, m):
    return ((x + m - 1) // m) * m


def _make_kernel(has_w):
    """Kernel over one (tn, C) tile of logits.

    has_w: whether a per-sample (tn, 1) weight ref is passed.
    """

    def kernel(*refs):
        if has_w:
            y_ref, w_ref, x_ref, out_ref = refs
        else:
            y_ref, x_ref, out_ref = refs
            w_ref = None

        x = x_ref[...].astype(jnp.float32)               # (tn, C) upcast in VMEM
        y = y_ref[...]                                    # (tn, 1) int32; -1 = pad row
        tn, c = x.shape

        # Numerically stable log-softmax picked at the label WITHOUT building
        # the full (tn, C) log_softmax tile:
        #   picked = (x - m)[label] - log(sum(exp(x - m)))
        m = jnp.max(x, axis=1, keepdims=True)             # (tn, 1)
        z = x - m
        lse = jnp.log(jnp.sum(jnp.exp(z), axis=1, keepdims=True))   # (tn, 1)

        cls = jax.lax.broadcasted_iota(jnp.int32, (tn, c), 1)
        mask = cls == y                                    # all-False for pad / OOR labels
        z_at_label = jnp.sum(jnp.where(mask, z, 0.0), axis=1, keepdims=True)  # (tn, 1)

        # pad rows (label -1) must contribute exactly zero
        picked = jnp.where(y >= 0, z_at_label - lse, 0.0)  # (tn, 1)

        if has_w:
            picked = picked * w_ref[...].astype(jnp.float32)

        # one partial sum per grid step; summed outside the kernel
        out_ref[...] = -jnp.sum(picked, axis=0, keepdims=True)    # (1, 1)

    return kernel


def _tile_budget_bytes():
    """Chip-aware per-step input budget and VMEM limit."""
    try:
        vmem_cap = int(pltpu.get_tpu_info().vmem_capacity_bytes)
    except Exception:
        vmem_cap = 64 * 1024 * 1024
    if vmem_cap >= 100 * 1024 * 1024:
        # v5e / v6e: 128 MiB physical VMEM -> big tiles amortize per-step overhead
        return 6 * 1024 * 1024, 64 * 1024 * 1024
    # v7x: 64 MiB VMEM per TensorCore -> keep the f32 upcast temporaries in check
    return 2 * 1024 * 1024 + 512 * 1024, 40 * 1024 * 1024


def cross_entropy_loss_tf(ypred, y, w=None, *, max_rows_per_tile=None):
    """Pallas implementation of CrossEntropyLossTF.forward."""
    n, c = ypred.shape
    itemsize = jnp.dtype(ypred.dtype).itemsize
    y_int = y.reshape(n).astype(jnp.int32)

    # --- fold W into either a scalar factor or a per-sample (N,1) weight ------
    # (the kernel never streams a (tn, C) weight tile)
    w_samp = None
    extra_scale = None
    if w is not None:
        w = jnp.asarray(w)
        if w.size == 1:                              # scalar weight: fold outside
            extra_scale = w.reshape(()).astype(jnp.float32)
        elif w.shape in ((c,), (1, c)):              # per-class weight: gather at label
            # TODO(synk): if XLA lowers this gather as a one-hot matmul it is still
            #             negligible vs. the main N*C stream; else move to a tiny
            #             separate Pallas gather pass.
            w_samp = jnp.take(w.reshape(c).astype(jnp.float32), y_int).reshape(n, 1)
        elif w.shape == (n, 1):                      # per-sample weight
            w_samp = w.astype(jnp.float32)
        elif w.shape == (n, c):                      # full elementwise weight: pick at label
            w_samp = jnp.take_along_axis(
                w.astype(jnp.float32), y_int.reshape(n, 1), axis=1)
        else:
            raise ValueError(f"W shape {w.shape} not broadcastable to {(n, c)}")

    # --- batch tile sizing: purely by bytes, rows multiple of 16, cap 8192 ----
    budget, vmem_limit = _tile_budget_bytes()
    row_bytes = max(c * itemsize, 1)
    rows = max(16, budget // row_bytes)
    tn = min(8192, rows, _round_up(n, 16))
    if max_rows_per_tile is not None:
        tn = min(tn, max(16, max_rows_per_tile))
    tn = max(16, (tn // 16) * 16)
    n_pad = _round_up(n, tn)
    grid_n = n_pad // tn

    # --- labels (N,1) int32; pad rows get -1 (never matches any class) --------
    y2 = y_int.reshape(n, 1)
    x = ypred
    if n_pad != n:
        pad = n_pad - n
        y2 = jnp.pad(y2, ((0, pad), (0, 0)), constant_values=-1)
        x = jnp.pad(x, ((0, pad), (0, 0)))
        if w_samp is not None:
            w_samp = jnp.pad(w_samp, ((0, pad), (0, 0)))

    in_specs = [pl.BlockSpec((tn, 1), lambda i: (i, 0))]          # labels
    args = [y2]
    if w_samp is not None:
        in_specs.append(pl.BlockSpec((tn, 1), lambda i: (i, 0)))  # per-sample weight
        args.append(w_samp)
    in_specs.append(pl.BlockSpec((tn, c), lambda i: (i, 0)))      # logits (orig dtype)
    args.append(x)

    partials = pl.pallas_call(
        _make_kernel(w_samp is not None),
        out_shape=jax.ShapeDtypeStruct((grid_n, 1), jnp.float32),
        grid=(grid_n,),
        in_specs=in_specs,
        out_specs=pl.BlockSpec((1, 1), lambda i: (i, 0)),
        compiler_params=pltpu.CompilerParams(
            dimension_semantics=("parallel",),    # independent per-tile partial sums
            vmem_limit_bytes=vmem_limit,
        ),
    )(*args)

    # mean(...) * C  ==  sum / N ; the 1/N scale is a single scalar multiply.
    loss = jnp.sum(partials) * jnp.float32(1.0 / float(n))
    if extra_scale is not None:
        loss = loss * extra_scale
    return loss


def _reference(ypred, y, w=None):
    # pure-JAX reference mirroring the PyTorch code
    n, c = ypred.shape
    sm = jax.nn.softmax(ypred.astype(jnp.float32), axis=1)
    onehot = jax.nn.one_hot(y, c, dtype=jnp.float32)
    if w is not None:
        onehot = onehot * jnp.asarray(w, dtype=jnp.float32)
    return jnp.mean(-onehot * jnp.log(sm)) * c


if __name__ == "__main__":
    key = jax.random.PRNGKey(0)
    k1, k2, k3, k4, k5 = jax.random.split(key, 5)

    N, C = 8, 32
    ypred = jax.random.normal(k1, (N, C), dtype=jnp.float32)
    y = jax.random.randint(k2, (N,), 0, C, dtype=jnp.int32)
    w_full = jax.random.uniform(k3, (N, C), dtype=jnp.float32)
    w_cls = jax.random.uniform(k4, (C,), dtype=jnp.float32)
    w_smp = jax.random.uniform(k5, (N, 1), dtype=jnp.float32)

    cases = [
        ("none", None),
        ("full", w_full),
        ("per_class", w_cls),
        ("per_sample", w_smp),
        ("scalar", jnp.float32(0.5)),
    ]
    for name, w in cases:
        loss = cross_entropy_loss_tf(ypred, y, w)
        jax.block_until_ready(loss)
        ref = _reference(ypred, y, w)
        assert jnp.allclose(loss, ref, atol=1e-5, rtol=1e-5), (name, loss, ref)

    # bf16 activations: no wrapper-side f32 copy; cast happens in VMEM in-kernel.
    loss_bf16 = cross_entropy_loss_tf(ypred.astype(jnp.bfloat16), y)
    jax.block_until_ready(loss_bf16)
    ref_bf16 = _reference(ypred.astype(jnp.bfloat16), y)
    assert jnp.allclose(loss_bf16, ref_bf16, atol=1e-4, rtol=1e-4), (loss_bf16, ref_bf16)

    # multi-tile + padding path: forces grid > 1 (per-tile partials, parallel grid)
    kk1, kk2, kk3 = jax.random.split(jax.random.PRNGKey(1), 3)
    N2 = 50
    ypred2 = jax.random.normal(kk1, (N2, C), dtype=jnp.float32)
    y2 = jax.random.randint(kk2, (N2,), 0, C, dtype=jnp.int32)
    w_cls2 = jax.random.uniform(kk3, (C,), dtype=jnp.float32)
    for w in (None, w_cls2):
        loss2 = cross_entropy_loss_tf(ypred2, y2, w, max_rows_per_tile=16)
        jax.block_until_ready(loss2)
        ref2 = _reference(ypred2, y2, w)
        assert jnp.allclose(loss2, ref2, atol=1e-5, rtol=1e-5), (loss2, ref2)

    print("KERNEL_OK")
</pallas_src>

<mosaic_0001>
module attributes {stable_mosaic.version = 11 : i64} {
  func.func @kernel(%arg0: i32, %arg1: memref<16x1xi32, #tpu.memory_space<vmem>>, %arg2: memref<16x32xf32, #tpu.memory_space<vmem>>, %arg3: memref<1x1xf32, #tpu.memory_space<vmem>>) attributes {dimension_semantics = [#tpu.dimension_semantics<parallel>], iteration_bounds = array<i64: 1>, scalar_prefetch = 0 : i64, scratch_operands = 0 : i64, tpu.core_type = #tpu.core_type<tc>, window_params = [{transform_indices = @transform_0, window_bounds = array<i64: 16, 1>}, {transform_indices = @transform_1, window_bounds = array<i64: 16, 32>}, {transform_indices = @transform_2, window_bounds = array<i64: 1, 1>}]} {
    %c0 = arith.constant 0 : index
    %c0_0 = arith.constant 0 : index
    %0 = vector.load %arg2[%c0, %c0_0] : memref<16x32xf32, #tpu.memory_space<vmem>>, vector<16x32xf32>
    %c0_1 = arith.constant 0 : index
    %c0_2 = arith.constant 0 : index
    %1 = vector.load %arg1[%c0_1, %c0_2] : memref<16x1xi32, #tpu.memory_space<vmem>>, vector<16x1xi32>
    %cst = arith.constant dense<0xFF800000> : vector<16xf32>
    %2 = vector.multi_reduction <maximumf>, %0, %cst [1] : vector<16x32xf32> to vector<16xf32>
    %3 = vector.shape_cast %2 : vector<16xf32> to vector<16x1xf32>
    %4 = vector.broadcast %3 : vector<16x1xf32> to vector<16x32xf32>
    %5 = arith.subf %0, %4 : vector<16x32xf32>
    %6 = math.exp %5 : vector<16x32xf32>
    %cst_3 = arith.constant dense<0.000000e+00> : vector<16xf32>
    %7 = vector.multi_reduction <add>, %6, %cst_3 [1] : vector<16x32xf32> to vector<16xf32>
    %8 = vector.shape_cast %7 : vector<16xf32> to vector<16x1xf32>
    %9 = math.log %8 : vector<16x1xf32>
    %10 = tpu.iota {dimensions = array<i32: 1>} : vector<16x32xi32>
    %11 = vector.broadcast %1 : vector<16x1xi32> to vector<16x32xi32>
    %12 = arith.cmpi eq, %10, %11 : vector<16x32xi32>
    %cst_4 = arith.constant 0.000000e+00 : f32
    %13 = vector.broadcast %cst_4 : f32 to vector<16x32xf32>
    %14 = arith.select %12, %5, %13 : vector<16x32xi1>, vector<16x32xf32>
    %cst_5 = arith.constant dense<0.000000e+00> : vector<16xf32>
    %15 = vector.multi_reduction <add>, %14, %cst_5 [1] : vector<16x32xf32> to vector<16xf32>
    %16 = vector.shape_cast %15 : vector<16xf32> to vector<16x1xf32>
    %c0_i32 = arith.constant 0 : i32
    %17 = vector.broadcast %c0_i32 : i32 to vector<16x1xi32>
    %18 = arith.cmpi sge, %1, %17 : vector<16x1xi32>
    %19 = arith.subf %16, %9 : vector<16x1xf32>
    %cst_6 = arith.constant 0.000000e+00 : f32
    %20 = vector.broadcast %cst_6 : f32 to vector<16x1xf32>
    %21 = arith.select %18, %19, %20 : vector<16x1xi1>, vector<16x1xf32>
    %cst_7 = arith.constant dense<0.000000e+00> : vector<1xf32>
    %22 = vector.multi_reduction <add>, %21, %cst_7 [0] : vector<16x1xf32> to vector<1xf32>
    %23 = vector.shape_cast %22 : vector<1xf32> to vector<1x1xf32>
    %cst_8 = arith.constant 0.000000e+00 : f32
    %24 = vector.broadcast %cst_8 : f32 to vector<1x1xf32>
    %25 = arith.subf %24, %23 : vector<1x1xf32>
    %c0_9 = arith.constant 0 : index
    %c0_10 = arith.constant 0 : index
    %26 = vector.load %arg3[%c0_9, %c0_10] : memref<1x1xf32, #tpu.memory_space<vmem>>, vector<1x1xf32>
    tpu.vector_store %arg3[%c0_9, %c0_10], %25 {strides = array<i32>} : memref<1x1xf32, #tpu.memory_space<vmem>>, vector<1x1xf32>,
    return
  }
  func.func @transform_0(%arg0: i32) -> (i32, i32) {
    %c0_i32 = arith.constant 0 : i32
    %c0_i32_0 = arith.constant 0 : i32
    return %arg0, %c0_i32 : i32, i32
  }
  func.func @transform_1(%arg0: i32) -> (i32, i32) {
    %c0_i32 = arith.constant 0 : i32
    %c0_i32_0 = arith.constant 0 : i32
    return %arg0, %c0_i32 : i32, i32
  }
  func.func @transform_2(%arg0: i32) -> (i32, i32) {
    %c0_i32 = arith.constant 0 : i32
    %c0_i32_0 = arith.constant 0 : i32
    return %arg0, %c0_i32 : i32, i32
  }
}

</mosaic_0001>

<bundles_post_ra>
// kernel: tpu_custom_call.1
= control target key start
LH: loop header
LB: loop body
LE: loop exit
PB: predicated region body
PF: predicated region fallthrough
CT: control target
= control target key end

     0   :  { %vm16_vm0 = vcmask 261120   ;;  %v126_v4 = vmov 0   ;;  %s173_s0 = inlined_call_operand.vmem [shape: s32[16,1], index: 0, kind: input, shape index: {}]   ;;  %s174_s1 = inlined_call_operand.vmem [shape: f32[16,32], index: 1, kind: input, shape index: {}]   ;;  %s175_s2 = inlined_call_operand.hbm [shape: f32[1,1], index: 2, kind: output, shape index: {}]  }
   0x1   :  { %v12_v0 = vld [vmem:[%s174_s1] sm:$0xff]  ;;  %v13_v1 = vld [vmem:[%s174_s1 + $0x8] sm:$0xff]  ;;  %92 = vset.pattern.permute.xlu1 %v126_v4  ;;  %93 = vset.pattern.permute.xlu0 %v126_v4 }
   0x2   :  { %v14_v2 = vld [vmem:[%s173_s0] sm:$0xff]  ;;  %v17_v3 = vsel %vm16_vm0, %v12_v0, -inf }
   0x3   :  { %7 = vsyncpa [#allocation3], 0  ;;  %18 = vmax.xlane.f32.xlu0 %v17_v3  ;;  %42 = vperm.xlu1 %92, %v14_v2   ;;  %v20_v5 = vsel %vm16_vm0, %v13_v1, -inf  ;;  %v15_v6 = vld [vmem:[%s173_s0 + $0x8] sm:$0xff]  ;;  %v39_v12 = vlaneseq  ;;  %vm57_vm3 = vcmp.ge.s32.totalorder %v14_v2, 0  ;;  %vm63_vm5 = vcmask 7168  }
   0x4   :  { %vm58_vm4 = vcmp.ge.s32.totalorder %v15_v6, 0  ;;  %s127_s0 = smov [#allocation2]   ;;  %vm74_vm6 = vcmask 0  }
   0x5   :  { %v40_v15 = vand.u32 127, %v39_v12  ;;  %s82_s1 = sshll.u32 %s127_s0, 4  ;;  %s83_s1 = int_to_ptr.vmem [resolvable:$true] %s82_s1 }
   0x6   :  { %s102_s17 = scalar_lea.vmem %s83_s1, 16  ;;  %s106_s18 = scalar_lea.vmem %s83_s1, 32 }
   0x7   :  { %21 = vmax.xlane.f32.xlu0 %v20_v5  ;;  %45 = vperm.xlu1 %92, %v15_v6   ;;  %p103_p0 = scmp.ne.s32.totalorder %s83_s1, %s102_s17  ;;  %p107_p1 = scmp.lt.s32.totalorder %s83_s1, %s83_s1 }
   0x8   :  { %p108_p2 = scmp.lt.s32.totalorder %s106_s18, %s102_s17 }
   0xa   :  { %p109_p3 = por %p108_p2, %p107_p1 }
   0xc   :  { %p110_p4 = pnand %p109_p3, %p103_p0 }
  0x82   :  { %v43_v14 = vpop.permute.xlu1 %42 }
  0x83   :  { %vm47_vm1 = vcmp.eq.s32.totalorder %v40_v15, %v43_v14 }
  0x86   :  { %v46_v17 = vpop.permute.xlu1 %45 }
  0x87   :  { %vm48_vm2 = vcmp.eq.s32.totalorder %v40_v15, %v46_v17 }
  0x90   :  { %v19_v7 = vpop.xlane.xlu0 %18 }
  0x91   :  { %v23_v8 = vsub.f32 %v12_v0, %v19_v7 }
  0x93   :  { %v25_v9 = vmul.f32 1.442695, %v23_v8  ;;  %v49_v19 = vsel %vm47_vm1, %v23_v8, 0.0 }
  0x94   :  { %v22_v10 = vpop.xlane.xlu0 %21  ;;  %v51_v21 = vsel %vm16_vm0, %v49_v19, 0.0 }
  0x95   :  { %94 = vpow2.f32 %v25_v9  ;;  %v24_v11 = vsub.f32 %v13_v1, %v22_v10 }
  0x97   :  { %v27_v13 = vmul.f32 1.442695, %v24_v11  ;;  %v50_v23 = vsel %vm48_vm2, %v24_v11, 0.0 }
  0x98   :  { %v54_v24 = vsel %vm16_vm0, %v50_v23, 0.0 }
  0x99   :  { %96 = vpow2.f32 %v27_v13 }
  0x9f   :  { %v95_v16 = vpop.eup %94 }
  0xa0   :  { %v29_v18 = vsel %vm16_vm0, %v95_v16, 0.0 }
  0xa1   :  { %30 = vadd.xlane.f32.xlu0 %v29_v18 }
  0xa3   :  { %v97_v20 = vpop.eup %96 }
  0xa4   :  { %v32_v22 = vsel %vm16_vm0, %v97_v20, 0.0 }
  0xa5   :  { %52 = vadd.xlane.f32.xlu0 %v51_v21  ;;  %33 = vadd.xlane.f32.xlu1 %v32_v22 }
  0xa9   :  { %55 = vadd.xlane.f32.xlu0 %v54_v24 }
 0x12e   :  { %v31_v25 = vpop.xlane.xlu0 %30 }
 0x12f   :  { %98 = vlog2.f32 %v31_v25 }
 0x132   :  { %v34_v26 = vpop.xlane.xlu1 %33  ;;  %v53_v28 = vpop.xlane.xlu0 %52 }
 0x133   :  { %100 = vlog2.f32 %v34_v26 }
 0x136   :  { %v56_v33 = vpop.xlane.xlu0 %55 }
 0x139   :  { %v99_v27 = vpop.eup %98 }
 0x13a   :  { %v36_v29 = vmul.f32 0.6931472, %v99_v27 }
 0x13c   :  { %v59_v30 = vsub.f32 %v53_v28, %v36_v29 }
 0x13d   :  { %v101_v31 = vpop.eup %100 }
 0x13e   :  { %v38_v32 = vmul.f32 0.6931472, %v101_v31  ;;  %v61_v34 = vsel %vm57_vm3, %v59_v30, 0.0 }
 0x13f   :  { %v64_v37 = vsel %vm63_vm5, %v61_v34, 0.0 }
 0x140   :  { %v60_v35 = vsub.f32 %v56_v33, %v38_v32 }
 0x142   :  { %v62_v36 = vsel %vm58_vm4, %v60_v35, 0.0 }
 0x143   :  { %v65_v38 = vsel %vm63_vm5, %v62_v36, 0.0 }
 0x144   :  { %v66_v39 = vadd.f32 %v65_v38, %v64_v37 }
 0x146   :  { %v67_v40 = vrot.slane %v66_v39, 4 }
 0x148   :  { %v68_v41 = vadd.f32 %v67_v40, %v66_v39 }
 0x14a   :  { %v69_v42 = vrot.slane %v68_v41, 2 }
 0x14c   :  { %v70_v43 = vadd.f32 %v69_v42, %v68_v41 }
 0x14e   :  { %v71_v44 = vrot.slane %v70_v43, 1 }
 0x150   :  { %v72_v45 = vadd.f32 %v71_v44, %v70_v43 }
 0x152   :  { %v73_v46 = vsub.f32 0.0, %v72_v45 }
 0x154   :  { %75 = vst.msk [vmem:[#allocation2] sm:$0x1] %vm74_vm6, %v73_v46 }
 0x155   :  { %113 = shalt.err (!%p110_p4)
}
 0x156   :  { %s114_s21 = scalar_lea.hbm %s175_s2, 16 }
 0x157   :  { %p115_p5 = scmp.ne.s32.totalorder %s175_s2, %s114_s21  ;;  %p118_p6 = scmp.lt.u32.totalorder %s114_s21, %s175_s2 }
 0x159   :  { %p120_p7 = pnand %p118_p6, %p115_p5 }
 0x15b   :  { %123 = shalt.err (!%p120_p7)
}
 0x15c   :  { %85 = dma.vmem_to_hbm [thread:$0]  %s83_s1, 16, %s175_s2, [#allocation3]  }
 0x15d   :  { %124 = dma.done.wait [#allocation3], 16  }
 0x15e   :  { %125 = vsyncadd [#allocation3], 4294967280 }
 0x15f   :  { %89 = vsyncpa [#allocation3], 1 }

</bundles_post_ra>
